<compile_context>
chip_gen: v5e
topology: v5e:2x2
jax: 0.10.0
libtpu: 0.0.40
codegen_flags: <defaults>
</compile_context>

<pallas_src>
import math
import functools

import jax
import jax.numpy as jnp
from jax.experimental import pallas as pl
from jax.experimental.pallas import tpu as pltpu


# ----------------------------- shared helpers -----------------------------

def _layernorm(x, gamma, beta, eps):
    # f32 statistics; rsqrt goes to the EUP slot.
    mu = jnp.mean(x, axis=-1, keepdims=True)
    var = jnp.mean((x - mu) ** 2, axis=-1, keepdims=True)
    return (x - mu) * jax.lax.rsqrt(var + eps) * gamma + beta


def _pick_tile(n, candidates=(1024, 512, 256, 128, 64, 32, 16, 8)):
    """Largest candidate tile that divides n (keeps the (8,128) rule); else n."""
    for c in candidates:
        if c <= n and n % c == 0:
            return c
    return n


# ----------------------------- layernorm kernel -----------------------------

def _layernorm_kernel(x_ref, g_ref, b_ref, o_ref, *, eps):
    o_ref[...] = _layernorm(x_ref[...], g_ref[...], b_ref[...], eps)


def layernorm(x2d, gamma, beta, eps):
    # x2d: (N, D); gamma/beta: (1, D).  Row-tiled, parallel grid.
    N, D = x2d.shape
    tn = _pick_tile(N)
    return pl.pallas_call(
        functools.partial(_layernorm_kernel, eps=eps),
        out_shape=jax.ShapeDtypeStruct((N, D), x2d.dtype),
        grid=(N // tn,),
        in_specs=[
            pl.BlockSpec((tn, D), lambda i: (i, 0)),
            pl.BlockSpec((1, D), lambda i: (0, 0)),
            pl.BlockSpec((1, D), lambda i: (0, 0)),
        ],
        out_specs=pl.BlockSpec((tn, D), lambda i: (i, 0)),
        compiler_params=pltpu.CompilerParams(dimension_semantics=("parallel",)),
    )(x2d, gamma, beta)


# --------------------------- encoder layer kernel ---------------------------

def _encoder_layer_kernel(xq_ref, xkv_ref, *refs,
                          num_heads, eps, final_eps, apply_final_ln):
    if apply_final_ln:
        (wq_ref, bq_ref, wkv_ref, bkv_ref, wo_ref, bo_ref,
         w1_ref, b1_ref, w2_ref, b2_ref,
         g1_ref, be1_ref, g2_ref, be2_ref,
         gf_ref, bf_ref, o_ref) = refs
    else:
        (wq_ref, bq_ref, wkv_ref, bkv_ref, wo_ref, bo_ref,
         w1_ref, b1_ref, w2_ref, b2_ref,
         g1_ref, be1_ref, g2_ref, be2_ref, o_ref) = refs
        gf_ref = bf_ref = None

    xq = xq_ref[0]                       # (Tq, D) f32  -- residual path stays f32
    xkv = xkv_ref[0]                     # (S,  D) f32  -- full sequence for K/V
    Tq, D = xq.shape
    S = xkv.shape[0]
    hd = D // num_heads
    scale = 1.0 / math.sqrt(hd)

    xq_b = xq.astype(jnp.bfloat16)
    xkv_b = xkv.astype(jnp.bfloat16)

    # --- projections: bf16 x bf16 -> f32 accumulation on the MXU ---
    # Q on the query tile; K/V fused into one (S,D)@(D,2D) matmul.
    q = jnp.dot(xq_b, wq_ref[...], preferred_element_type=jnp.float32) + bq_ref[...]
    kv = jnp.dot(xkv_b, wkv_ref[...], preferred_element_type=jnp.float32) + bkv_ref[...]
    k = kv[:, :D]
    v = kv[:, D:]

    q = q * scale                        # fold 1/sqrt(hd) into q (cheaper than scaling scores)

    q3 = q.reshape(Tq, num_heads, hd).astype(jnp.bfloat16)
    k3 = k.reshape(S, num_heads, hd).astype(jnp.bfloat16)
    v3 = v.reshape(S, num_heads, hd).astype(jnp.bfloat16)

    # Batched-head scores (H, Tq, S): one batched dot_general, no explicit k.T.
    s = jnp.einsum('qhd,khd->hqk', q3, k3, preferred_element_type=jnp.float32)
    s = s - jnp.max(s, axis=-1, keepdims=True)
    p = jnp.exp(s)
    p = p * pl.reciprocal(jnp.sum(p, axis=-1, keepdims=True), approx=True)

    # Context: (H,Tq,S) x (S,H,hd) -> (Tq,H,hd) -> (Tq,D); ONE output projection.
    ctx = jnp.einsum('hqk,khd->qhd', p.astype(jnp.bfloat16), v3,
                     preferred_element_type=jnp.float32)
    ctx = ctx.reshape(Tq, D).astype(jnp.bfloat16)
    attn = jnp.dot(ctx, wo_ref[...], preferred_element_type=jnp.float32) + bo_ref[...]

    # --- residual + norm1 (f32) ---
    x1 = _layernorm(xq + attn, g1_ref[...], be1_ref[...], eps)

    # --- position-wise feed-forward (ReLU), bf16 matmuls / f32 accumulate ---
    h1 = jnp.dot(x1.astype(jnp.bfloat16), w1_ref[...],
                 preferred_element_type=jnp.float32) + b1_ref[...]
    h1 = jnp.maximum(h1, 0.0)
    ff = jnp.dot(h1.astype(jnp.bfloat16), w2_ref[...],
                 preferred_element_type=jnp.float32) + b2_ref[...]

    # --- residual + norm2 (f32), optionally fused final encoder LayerNorm ---
    x2 = _layernorm(x1 + ff, g2_ref[...], be2_ref[...], eps)
    if apply_final_ln:
        x2 = _layernorm(x2, gf_ref[...], bf_ref[...], final_eps)
    o_ref[0] = x2


_LAYER_PARAM_ORDER = ('wq', 'bq', 'wkv', 'bkv', 'wo', 'bo',
                      'w1', 'b1', 'w2', 'b2', 'g1', 'be1', 'g2', 'be2')


def encoder_layer(x, params, num_heads, eps=1e-5, final_ln=None, final_ln_eps=1e-5):
    B, S, D = x.shape
    assert D % num_heads == 0
    tq = _pick_tile(S)                   # sequence (query) tile
    n_q = S // tq

    apply_final = final_ln is not None
    kernel = functools.partial(_encoder_layer_kernel, num_heads=num_heads,
                               eps=eps, final_eps=final_ln_eps,
                               apply_final_ln=apply_final)

    in_specs = [
        pl.BlockSpec((1, tq, D), lambda b, qi: (b, qi, 0)),   # query tile
        pl.BlockSpec((1, S, D), lambda b, qi: (b, 0, 0)),     # full sequence (K/V source)
    ]
    args = [x, x]
    tensors = [params[name] for name in _LAYER_PARAM_ORDER]
    if apply_final:
        tensors += list(final_ln)
    for p in tensors:
        in_specs.append(pl.BlockSpec(p.shape, lambda b, qi: (0, 0)))
        args.append(p)

    # TODO(synk): at production BERT sizes, stream KV tiles flash-style, tile the
    # FFN over FF columns (VMEM budget on v7x), and prefetch next-layer weights
    # across pallas_call boundaries (P10) to hide the weight DMA.
    return pl.pallas_call(
        kernel,
        out_shape=jax.ShapeDtypeStruct((B, S, D), x.dtype),
        grid=(B, n_q),
        in_specs=in_specs,
        out_specs=pl.BlockSpec((1, tq, D), lambda b, qi: (b, qi, 0)),
        compiler_params=pltpu.CompilerParams(
            dimension_semantics=("parallel", "parallel")),
    )(*args)


# ------------------------------ full forward ------------------------------

def transformer_encoder_forward(input_ids, params, *, num_heads):
    B, S = input_ids.shape
    emb = params['embeddings']
    D = emb['word'].shape[1]

    # BertEmbeddings: word + position + token_type (token_type_ids = 0), then LN.
    # (gather is plain-JAX glue; LN runs in the tiled Pallas layernorm kernel)
    x = (jnp.take(emb['word'], input_ids, axis=0)
         + emb['pos'][None, :S, :]
         + emb['type'][0][None, None, :])
    x = layernorm(x.reshape(B * S, D), emb['ln_g'], emb['ln_b'],
                  eps=1e-12).reshape(B, S, D)
    # TODO(synk): dropout layers omitted (identity in eval / deterministic mode)

    n_layers = len(params['layers'])
    for li, layer_params in enumerate(params['layers']):
        is_last = (li == n_layers - 1)
        x = encoder_layer(
            x, layer_params, num_heads=num_heads, eps=1e-5,
            final_ln=((params['final_ln_g'], params['final_ln_b'])
                      if is_last else None),
            final_ln_eps=1e-5)
    return x


# --------------------------- deterministic init ---------------------------

def init_params(key, *, vocab_size, max_pos, type_vocab, hidden, ff_dim,
                num_layers):
    keys = jax.random.split(key, 3 + num_layers)

    def nrm(k, shape, dtype=jnp.float32):
        return (0.02 * jax.random.normal(k, shape)).astype(dtype)

    emb = {
        'word': nrm(keys[0], (vocab_size, hidden)),
        'pos': nrm(keys[1], (max_pos, hidden)),
        'type': nrm(keys[2], (type_vocab, hidden)),
        'ln_g': jnp.ones((1, hidden), jnp.float32),
        'ln_b': jnp.zeros((1, hidden), jnp.float32),
    }

    layers = []
    for li in range(num_layers):
        lk = jax.random.split(keys[3 + li], 6)
        # Matmul weights stored in bf16 (halves weight DMA / VMEM); biases and
        # layernorm params stay f32.  K and V are stored pre-fused (D, 2D).
        wk = nrm(lk[1], (hidden, hidden), jnp.bfloat16)
        wv = nrm(lk[2], (hidden, hidden), jnp.bfloat16)
        layers.append({
            'wq': nrm(lk[0], (hidden, hidden), jnp.bfloat16),
            'bq': jnp.zeros((1, hidden), jnp.float32),
            'wkv': jnp.concatenate([wk, wv], axis=1),
            'bkv': jnp.zeros((1, 2 * hidden), jnp.float32),
            'wo': nrm(lk[3], (hidden, hidden), jnp.bfloat16),
            'bo': jnp.zeros((1, hidden), jnp.float32),
            'w1': nrm(lk[4], (hidden, ff_dim), jnp.bfloat16),
            'b1': jnp.zeros((1, ff_dim), jnp.float32),
            'w2': nrm(lk[5], (ff_dim, hidden), jnp.bfloat16),
            'b2': jnp.zeros((1, hidden), jnp.float32),
            'g1': jnp.ones((1, hidden), jnp.float32),
            'be1': jnp.zeros((1, hidden), jnp.float32),
            'g2': jnp.ones((1, hidden), jnp.float32),
            'be2': jnp.zeros((1, hidden), jnp.float32),
        })

    return {
        'embeddings': emb,
        'layers': layers,
        'final_ln_g': jnp.ones((1, hidden), jnp.float32),
        'final_ln_b': jnp.zeros((1, hidden), jnp.float32),
    }


# ----------------------------------- main -----------------------------------

if __name__ == "__main__":
    B, S = 2, 8                 # batch, sequence length
    HIDDEN, HEADS, FF = 32, 4, 64
    VOCAB, MAX_POS, TYPES = 100, 16, 2
    NUM_LAYERS = 2

    key = jax.random.PRNGKey(0)
    k_params, k_ids = jax.random.split(key)

    params = init_params(k_params, vocab_size=VOCAB, max_pos=MAX_POS,
                         type_vocab=TYPES, hidden=HIDDEN, ff_dim=FF,
                         num_layers=NUM_LAYERS)
    input_ids = jax.random.randint(k_ids, (B, S), 0, VOCAB, dtype=jnp.int32)

    out = transformer_encoder_forward(input_ids, params, num_heads=HEADS)
    out = jax.block_until_ready(out)
    assert out.shape == (B, S, HIDDEN)
    assert bool(jnp.all(jnp.isfinite(out)))
    print("KERNEL_OK")
</pallas_src>

<mosaic_0001>
module attributes {stable_mosaic.version = 11 : i64} {
  func.func @_layernorm_kernel(%arg0: i32, %arg1: memref<16x32xf32, #tpu.memory_space<vmem>>, %arg2: memref<1x32xf32, #tpu.memory_space<vmem>>, %arg3: memref<1x32xf32, #tpu.memory_space<vmem>>, %arg4: memref<16x32xf32, #tpu.memory_space<vmem>>) attributes {dimension_semantics = [#tpu.dimension_semantics<parallel>], iteration_bounds = array<i64: 1>, scalar_prefetch = 0 : i64, scratch_operands = 0 : i64, tpu.core_type = #tpu.core_type<tc>, window_params = [{transform_indices = @transform_0, window_bounds = array<i64: 16, 32>}, {pipeline_mode = #tpu.pipeline_mode<synchronous>, transform_indices = @transform_1, window_bounds = array<i64: 1, 32>}, {pipeline_mode = #tpu.pipeline_mode<synchronous>, transform_indices = @transform_2, window_bounds = array<i64: 1, 32>}, {transform_indices = @transform_3, window_bounds = array<i64: 16, 32>}]} {
    %c0 = arith.constant 0 : index
    %c0_0 = arith.constant 0 : index
    %0 = vector.load %arg1[%c0, %c0_0] : memref<16x32xf32, #tpu.memory_space<vmem>>, vector<16x32xf32>
    %c0_1 = arith.constant 0 : index
    %c0_2 = arith.constant 0 : index
    %1 = vector.load %arg2[%c0_1, %c0_2] : memref<1x32xf32, #tpu.memory_space<vmem>>, vector<1x32xf32>
    %c0_3 = arith.constant 0 : index
    %c0_4 = arith.constant 0 : index
    %2 = vector.load %arg3[%c0_3, %c0_4] : memref<1x32xf32, #tpu.memory_space<vmem>>, vector<1x32xf32>
    %cst = arith.constant dense<0.000000e+00> : vector<16xf32>
    %3 = vector.multi_reduction <add>, %0, %cst [1] : vector<16x32xf32> to vector<16xf32>
    %4 = vector.shape_cast %3 : vector<16xf32> to vector<16x1xf32>
    %cst_5 = arith.constant 3.200000e+01 : f32
    %5 = vector.broadcast %cst_5 : f32 to vector<16x1xf32>
    %6 = arith.divf %4, %5 : vector<16x1xf32>
    %7 = vector.broadcast %6 : vector<16x1xf32> to vector<16x32xf32>
    %8 = arith.subf %0, %7 : vector<16x32xf32>
    %9 = arith.mulf %8, %8 : vector<16x32xf32>
    %cst_6 = arith.constant dense<0.000000e+00> : vector<16xf32>
    %10 = vector.multi_reduction <add>, %9, %cst_6 [1] : vector<16x32xf32> to vector<16xf32>
    %11 = vector.shape_cast %10 : vector<16xf32> to vector<16x1xf32>
    %cst_7 = arith.constant 3.200000e+01 : f32
    %12 = vector.broadcast %cst_7 : f32 to vector<16x1xf32>
    %13 = arith.divf %11, %12 : vector<16x1xf32>
    %14 = vector.broadcast %6 : vector<16x1xf32> to vector<16x32xf32>
    %15 = arith.subf %0, %14 : vector<16x32xf32>
    %cst_8 = arith.constant 9.99999996E-13 : f32
    %16 = vector.broadcast %cst_8 : f32 to vector<16x1xf32>
    %17 = arith.addf %13, %16 : vector<16x1xf32>
    %18 = math.rsqrt %17 : vector<16x1xf32>
    %19 = vector.broadcast %18 : vector<16x1xf32> to vector<16x32xf32>
    %20 = arith.mulf %15, %19 : vector<16x32xf32>
    %21 = vector.broadcast %1 : vector<1x32xf32> to vector<16x32xf32>
    %22 = arith.mulf %20, %21 : vector<16x32xf32>
    %23 = vector.broadcast %2 : vector<1x32xf32> to vector<16x32xf32>
    %24 = arith.addf %22, %23 : vector<16x32xf32>
    %c0_9 = arith.constant 0 : index
    %c0_10 = arith.constant 0 : index
    %25 = vector.load %arg4[%c0_9, %c0_10] : memref<16x32xf32, #tpu.memory_space<vmem>>, vector<16x32xf32>
    tpu.vector_store %arg4[%c0_9, %c0_10], %24 {strides = array<i32>} : memref<16x32xf32, #tpu.memory_space<vmem>>, vector<16x32xf32>,
    return
  }
  func.func @transform_0(%arg0: i32) -> (i32, i32) {
    %c0_i32 = arith.constant 0 : i32
    %c0_i32_0 = arith.constant 0 : i32
    return %arg0, %c0_i32 : i32, i32
  }
  func.func @transform_1(%arg0: i32) -> (i32, i32) {
    %c0_i32 = arith.constant 0 : i32
    %c0_i32_0 = arith.constant 0 : i32
    %c0_i32_1 = arith.constant 0 : i32
    return %c0_i32, %c0_i32_0 : i32, i32
  }
  func.func @transform_2(%arg0: i32) -> (i32, i32) {
    %c0_i32 = arith.constant 0 : i32
    %c0_i32_0 = arith.constant 0 : i32
    %c0_i32_1 = arith.constant 0 : i32
    return %c0_i32, %c0_i32_0 : i32, i32
  }
  func.func @transform_3(%arg0: i32) -> (i32, i32) {
    %c0_i32 = arith.constant 0 : i32
    %c0_i32_0 = arith.constant 0 : i32
    return %arg0, %c0_i32 : i32, i32
  }
}

</mosaic_0001>

<bundles_post_ra>
// kernel: tpu_custom_call.1
= control target key start
LH: loop header
LB: loop body
LE: loop exit
PB: predicated region body
PF: predicated region fallthrough
CT: control target
= control target key end

     0   :  { %8 = vsyncpa [#allocation3], 0  ;;  %s275_s0 = inlined_call_operand.hbm [shape: f32[16,32], index: 0, kind: input, shape index: {}]   ;;  %s276_s1 = inlined_call_operand.hbm [shape: f32[1,32], index: 1, kind: input, shape index: {}]   ;;  %s277_s2 = inlined_call_operand.vmem [shape: f32[1,32], index: 2, kind: input, shape index: {}]   ;;  %s278_s3 = inlined_call_operand.hbm [shape: f32[16,32], index: 3, kind: output, shape index: {}]  }
   0x1   :  { %9 = vsyncpa [#allocation6], 0 }
   0x2   :  { %10 = vsyncpa [#allocation4], 0  ;;  %s15_s14 = sshll.u32 %s275_s0, 4  ;;  %s225_s15 = smov [#allocation2]   ;;  %s16_s14 = int_to_ptr.hbm [resolvable:$true] %s15_s14 }
   0x3   :  { %s17_s16 = sshll.u32 %s225_s15, 4  ;;  %s29_s19 = sshll.u32 %s276_s1, 4  ;;  %s18_s16 = int_to_ptr.vmem [resolvable:$true] %s17_s16  ;;  %s30_s19 = int_to_ptr.hbm [resolvable:$true] %s29_s19 }
   0x4   :  { %s226_s20 = smov 128   ;;  %s227_s21 = smov 8  }
   0x5   :  { %23 = dma.hbm_to_vmem [thread:$0]  %s16_s14, 256, %s18_s16, [#allocation3], %s226_s20, %s226_s20, %s227_s21  }
   0x6   :  { %s228_s22 = smov [#allocation5]  }
   0x7   :  { %s31_s23 = sshll.u32 %s228_s22, 4  ;;  %s32_s23 = int_to_ptr.vmem [resolvable:$true] %s31_s23 }
   0x8   :  { %34 = dma.hbm_to_vmem [thread:$0]  %s30_s19, 16, %s32_s23, [#allocation6]  }
   0x9   :  { %219 = dma.done.wait [#allocation3], 256  }
   0xa   :  { %220 = vsyncadd [#allocation3], 4294967040 }
   0xb   :  { %221 = dma.done.wait [#allocation6], 16  }
   0xc   :  { %222 = vsyncadd [#allocation6], 4294967280  ;;  %vm49_vm0 = vcmask 261120   ;;  %v45_v0 = vld [vmem:[#allocation2] sm:$0xff]  ;;  %v46_v2 = vld [vmem:[#allocation2 + $0x8] sm:$0xff]  ;;  %v229_v4 = vmov 32.0  }
   0xd   :  { %v50_v1 = vsel %vm49_vm0, %v45_v0, 0.0  ;;  %v53_v3 = vsel %vm49_vm0, %v46_v2, 0.0  ;;  %141 = vrcp.f32 %v229_v4  ;;  %v139_v35 = vld [vmem:[#allocation5] ss:$0 sm:$0xff]  ;;  %v140_v39 = vld [vmem:[%s277_s2] ss:$0 sm:$0xff] }
   0xe   :  { %51 = vadd.xlane.f32.xlu0 %v50_v1  ;;  %s230_s24 = smov [#allocation7]   ;;  %s119_s28 = sshll.u32 %s278_s3, 4  ;;  %s120_s28 = int_to_ptr.hbm [resolvable:$true] %s119_s28 }
   0xf   :  { %s117_s25 = sshll.u32 %s230_s24, 4  ;;  %s118_s25 = int_to_ptr.vmem [resolvable:$true] %s117_s25 }
  0x13   :  { %v142_v5 = vpop.eup %141 }
  0x14   :  { %v57_v6 = vmul.f32 32.0, %v142_v5  ;;  %vm61_vm1 = vweird.f32 %v142_v5 }
  0x16   :  { %54 = vadd.xlane.f32.xlu0 %v53_v3  ;;  %v58_v7 = vsub.f32 1.0, %v57_v6 }
  0x18   :  { %v59_v8 = vmul.f32 %v142_v5, %v58_v7 }
  0x1a   :  { %v60_v9 = vadd.f32 %v142_v5, %v59_v8 }
  0x1c   :  { %v62_v10 = vsel %vm61_vm1, %v142_v5, %v60_v9 }
  0x81   :  { %v52_v11 = vpop.xlane.xlu0 %51 }
  0x82   :  { %v63_v12 = vmul.f32 %v62_v10, %v52_v11 }
  0x84   :  { %v65_v13 = vsub.f32 %v45_v0, %v63_v12 }
  0x86   :  { %v67_v14 = vmul.f32 %v65_v13, %v65_v13 }
  0x88   :  { %v69_v15 = vsel %vm49_vm0, %v67_v14, 0.0 }
  0x89   :  { %70 = vadd.xlane.f32.xlu1 %v69_v15  ;;  %v55_v16 = vpop.xlane.xlu0 %54 }
  0x8a   :  { %v64_v17 = vmul.f32 %v62_v10, %v55_v16 }
  0x8c   :  { %v66_v18 = vsub.f32 %v46_v2, %v64_v17 }
  0x8e   :  { %v68_v19 = vmul.f32 %v66_v18, %v66_v18 }
  0x90   :  { %v72_v20 = vsel %vm49_vm0, %v68_v19, 0.0 }
  0x91   :  { %73 = vadd.xlane.f32.xlu1 %v72_v20 }
  0xfc   :  { %v71_v21 = vpop.xlane.xlu1 %70 }
  0xfd   :  { %v75_v22 = vmul.f32 %v71_v21, %v62_v10 }
  0xff   :  { %v77_v23 = vadd.f32 1e-12, %v75_v22 }
 0x101   :  { %143 = vrsqrt.f32 %v77_v23  ;;  %vm85_vm3 = vweird.f32 %v77_v23 }
 0x104   :  { %v74_v24 = vpop.xlane.xlu1 %73 }
 0x105   :  { %v76_v25 = vmul.f32 %v74_v24, %v62_v10 }
 0x107   :  { %v144_v26 = vpop.eup %143  ;;  %v78_v27 = vadd.f32 1e-12, %v76_v25 }
 0x108   :  { %v80_v28 = vmul.f32 %v144_v26, %v77_v23  ;;  %vm86_vm2 = vweird.f32 %v144_v26 }
 0x109   :  { %145 = vrsqrt.f32 %v78_v27  ;;  %vm87_vm4 = vmor %vm85_vm3, %vm86_vm2  ;;  %vm95_vm6 = vweird.f32 %v78_v27 }
 0x10a   :  { %v81_v29 = vmul.f32 %v144_v26, %v80_v28 }
 0x10c   :  { %v82_v30 = vmul.f32 0.5, %v81_v29 }
 0x10e   :  { %v83_v31 = vsub.f32 1.5, %v82_v30 }
 0x10f   :  { %v146_v32 = vpop.eup %145 }
 0x110   :  { %v84_v33 = vmul.f32 %v144_v26, %v83_v31  ;;  %v90_v34 = vmul.f32 %v146_v32, %v78_v27  ;;  %vm96_vm5 = vweird.f32 %v146_v32 }
 0x111   :  { %vm97_vm7 = vmor %vm95_vm6, %vm96_vm5 }
 0x112   :  { %v88_v36 = vsel %vm87_vm4, %v144_v26, %v84_v33  ;;  %v91_v37 = vmul.f32 %v146_v32, %v90_v34 }
 0x113   :  { %v99_v38 = vmul.f32 %v88_v36, %v65_v13 }
 0x114   :  { %v92_v40 = vmul.f32 0.5, %v91_v37 }
 0x115   :  { %v104_v41 = vmul.f32 %v139_v35, %v99_v38 }
 0x116   :  { %v93_v42 = vsub.f32 1.5, %v92_v40 }
 0x117   :  { %v109_v43 = vadd.f32 %v140_v39, %v104_v41 }
 0x118   :  { %v94_v44 = vmul.f32 %v146_v32, %v93_v42 }
 0x119   :  { %111 = vst.msk [vmem:[#allocation7] sm:$0xff] %vm49_vm0, %v109_v43 }
 0x11a   :  { %v98_v45 = vsel %vm97_vm7, %v146_v32, %v94_v44 }
 0x11b   :  { %v100_v46 = vmul.f32 %v98_v45, %v66_v18 }
 0x11d   :  { %v105_v47 = vmul.f32 %v139_v35, %v100_v46 }
 0x11f   :  { %v110_v48 = vadd.f32 %v140_v39, %v105_v47 }
 0x121   :  { %112 = vst.msk [vmem:[#allocation7 + $0x8] sm:$0xff] %vm49_vm0, %v110_v48 }
 0x122   :  { %125 = dma.vmem_to_hbm [thread:$0]  %s118_s25, 256, %s120_s28, [#allocation4], %s226_s20, %s226_s20, %s227_s21  }
 0x123   :  { %223 = dma.done.wait [#allocation4], 256  }
 0x124   :  { %224 = vsyncadd [#allocation4], 4294967040 }
 0x125   :  { %130 = vsyncpa [#allocation3], 1 }
 0x126   :  { %131 = vsyncpa [#allocation6], 1 }
 0x127   :  { %132 = vsyncpa [#allocation4], 1 }

</bundles_post_ra>
